<compile_context>
chip_gen: v7x
topology: tpu7x:2x2x1
jax: 0.10.0
libtpu: 0.0.40
codegen_flags: <defaults>
</compile_context>

<pallas_src>
import functools

import jax
import jax.numpy as jnp
import numpy as np
from jax.experimental import pallas as pl
from jax.experimental.pallas import tpu as pltpu


# ----------------------------------------------------------------------------
# Fused kernel: prototypes -> scores (-squared euclidean) -> KL distillation loss
# ----------------------------------------------------------------------------
def _episode_kernel(onehot_ref, zs_ref, zq_ref, tlog_ref, scores_ref, loss_ref,
                    *, way, nq, T):
    # onehot_ref : (way_pad, Ns) f32, row c = one-hot over supports scaled by 1/count_c
    #              (padded rows are all-zero)
    # zs_ref     : (Ns, D)       f32, support embeddings
    # zq_ref     : (Nq, D)       f32, query embeddings
    # tlog_ref   : (Nq, way_pad) f32, teacher logits (zero-padded past `way`)
    # scores_ref : (Nq, way_pad) f32, -euclidean_dist(z_query, z_proto) (lane-dense)
    # loss_ref   : (1, 1)        f32 in SMEM, kldiv(scores, teacher, T) * T^2 (batchmean)
    onehot = onehot_ref[...]
    zs = zs_ref[...]
    zq = zq_ref[...]

    # prototypes = per-class mean, as an MXU matmul (1/count folded into onehot)
    protos = jnp.dot(onehot, zs, preferred_element_type=jnp.float32)        # (way_pad, D)

    # Gram-form squared euclidean distance; all O(Nq*way*D) work on the MXU.
    cross = jax.lax.dot_general(zq, protos, (((1,), (1,)), ((), ())),
                                preferred_element_type=jnp.float32)         # (Nq, way_pad)
    q2 = jnp.sum(zq * zq, axis=1, keepdims=True)                            # (Nq, 1)
    p2 = jnp.sum(protos * protos, axis=1)[None, :]                          # (1, way_pad)
    scores = 2.0 * cross - q2 - p2                                          # = -||q - p||^2
    scores_ref[...] = scores

    # --- fused kldiv(scores, teacher, T), reduction='batchmean' ------------
    # mask out padded classes so they don't enter either softmax
    col = jax.lax.broadcasted_iota(jnp.int32, scores.shape, dimension=1)
    valid = col < way
    neg_big = jnp.float32(-1e30)
    inv_T = jnp.float32(1.0 / T)

    lg = jnp.where(valid, scores * inv_T, neg_big)
    tg = jnp.where(valid, tlog_ref[...] * inv_T, neg_big)

    # log_softmax(scores / T)
    lg_s = lg - jnp.max(lg, axis=1, keepdims=True)
    logq = lg_s - jnp.log(
        jnp.sum(jnp.where(valid, jnp.exp(lg_s), 0.0), axis=1, keepdims=True))

    # analytic log_softmax(teacher / T); p = exp(logp) (no log(p) / where-on-zero hazard)
    tg_s = tg - jnp.max(tg, axis=1, keepdims=True)
    logp = tg_s - jnp.log(
        jnp.sum(jnp.where(valid, jnp.exp(tg_s), 0.0), axis=1, keepdims=True))
    p = jnp.exp(logp)

    elem = jnp.where(valid, p * (logp - logq), 0.0)
    loss_ref[0, 0] = jnp.sum(elem) * jnp.float32(T * T / nq)


def episode_scores_and_kldiv(z_support, support_label, z_query, teacher_logits,
                             way, T=1.0):
    """Single fused pallas_call.

    Returns:
      scores : (Nq, way)  = -euclidean_dist(z_query, z_proto)
      loss   : scalar     = kldiv(scores, teacher_logits, T), reduction='batchmean'
    """
    ns, d = z_support.shape
    nq, _ = z_query.shape
    way_pad = int(pl.cdiv(way, 128)) * 128          # lane-dense scores output

    # one-hot scaled by 1/count (per-class-mean matmul weights), zero-padded rows
    onehot = jax.nn.one_hot(support_label, way, dtype=jnp.float32)          # (Ns, way)
    counts = jnp.sum(onehot, axis=0)                                        # (way,)
    inv_counts = jnp.where(counts > 0, 1.0 / counts, 0.0)
    onehot_scaled = (onehot * inv_counts[None, :]).T                        # (way, Ns)
    onehot_pad = jnp.zeros((way_pad, ns), jnp.float32).at[:way, :].set(onehot_scaled)

    tlog_pad = jnp.zeros((nq, way_pad), jnp.float32).at[:, :way].set(
        teacher_logits.astype(jnp.float32))

    kernel = functools.partial(_episode_kernel, way=way, nq=nq, T=float(T))
    scores_pad, loss = pl.pallas_call(
        kernel,
        out_shape=(
            jax.ShapeDtypeStruct((nq, way_pad), jnp.float32),
            jax.ShapeDtypeStruct((1, 1), jnp.float32),
        ),
        in_specs=[
            pl.BlockSpec(memory_space=pltpu.MemorySpace.VMEM),
            pl.BlockSpec(memory_space=pltpu.MemorySpace.VMEM),
            pl.BlockSpec(memory_space=pltpu.MemorySpace.VMEM),
            pl.BlockSpec(memory_space=pltpu.MemorySpace.VMEM),
        ],
        out_specs=(
            pl.BlockSpec(memory_space=pltpu.MemorySpace.VMEM),
            pl.BlockSpec(memory_space=pltpu.MemorySpace.SMEM),
        ),
    )(onehot_pad, z_support.astype(jnp.float32), z_query.astype(jnp.float32), tlog_pad)

    return scores_pad[:, :way], loss[0, 0]


def proto_scores(z_support, support_label, z_query, way):
    """test_once hot path: just the prototypical scores (teacher-free)."""
    nq = z_query.shape[0]
    zeros_t = jnp.zeros((nq, way), jnp.float32)
    scores, _ = episode_scores_and_kldiv(z_support, support_label, z_query, zeros_t, way)
    return scores


# ----------------------------------------------------------------------------
# Pure JAX references (match the PyTorch euclidean_dist / kldiv semantics)
# ----------------------------------------------------------------------------
def _ref_scores(z_support, support_label, z_query, way):
    protos = jnp.stack(
        [z_support[support_label == c].mean(0) for c in range(way)], axis=0)
    diff = z_query[:, None, :] - protos[None, :, :]
    return -jnp.sum(diff * diff, axis=-1)


def _ref_kldiv(logits, targets, T=1.0):
    logq = jax.nn.log_softmax(logits / T, axis=1)
    p = jax.nn.softmax(targets / T, axis=1)
    return jnp.sum(p * (jnp.log(p) - logq)) / logits.shape[0] * (T * T)


if __name__ == "__main__":
    key = jax.random.PRNGKey(0)
    way = 4
    num_sup = 2
    num_qur = 4
    D = 128  # embedding dim (lane-friendly)

    ns = way * num_sup
    nq = way * num_qur

    k1, k2, k3 = jax.random.split(key, 3)
    z_support = jax.random.normal(k1, (ns, D), dtype=jnp.float32)
    z_query = jax.random.normal(k2, (nq, D), dtype=jnp.float32)
    support_label = jnp.array(list(range(way)) * num_sup, dtype=jnp.int32)
    teacher_logits = jax.random.normal(k3, (nq, way), dtype=jnp.float32)

    # fused forward: scores (-euclidean distance to prototypes) + distillation KL loss
    scores, loss = episode_scores_and_kldiv(
        z_support, support_label, z_query, teacher_logits, way, T=1.0)
    scores = jax.block_until_ready(scores)
    loss = jax.block_until_ready(loss)

    # correctness check against plain-JAX references (Gram form vs expand-subtract)
    ref_s = _ref_scores(z_support, support_label, z_query, way)
    ref_l = _ref_kldiv(ref_s, teacher_logits, T=1.0)
    assert np.allclose(np.asarray(scores), np.asarray(ref_s), rtol=1e-4, atol=1e-3), (
        np.max(np.abs(np.asarray(scores) - np.asarray(ref_s))))
    assert np.allclose(float(loss), float(ref_l), rtol=1e-4, atol=1e-3), (
        float(loss), float(ref_l))

    # also exercise the teacher-free (test_once) path
    s2 = jax.block_until_ready(proto_scores(z_support, support_label, z_query, way))
    assert np.allclose(np.asarray(s2), np.asarray(ref_s), rtol=1e-4, atol=1e-3)

    print("KERNEL_OK")
</pallas_src>

<mosaic_0001>
module attributes {stable_mosaic.version = 11 : i64} {
  func.func @_episode_kernel(%arg0: memref<128x8xf32, #tpu.memory_space<vmem>>, %arg1: memref<8x128xf32, #tpu.memory_space<vmem>>, %arg2: memref<16x128xf32, #tpu.memory_space<vmem>>, %arg3: memref<16x128xf32, #tpu.memory_space<vmem>>, %arg4: memref<16x128xf32, #tpu.memory_space<vmem>>, %arg5: memref<1x1xf32, #tpu.memory_space<smem>>) attributes {dimension_semantics = [], scalar_prefetch = 0 : i64, scratch_operands = 0 : i64, tpu.core_type = #tpu.core_type<tc>} {
    %c0 = arith.constant 0 : index
    %c0_0 = arith.constant 0 : index
    %0 = vector.load %arg0[%c0, %c0_0] : memref<128x8xf32, #tpu.memory_space<vmem>>, vector<128x8xf32>
    %c0_1 = arith.constant 0 : index
    %c0_2 = arith.constant 0 : index
    %1 = vector.load %arg1[%c0_1, %c0_2] : memref<8x128xf32, #tpu.memory_space<vmem>>, vector<8x128xf32>
    %c0_3 = arith.constant 0 : index
    %c0_4 = arith.constant 0 : index
    %2 = vector.load %arg2[%c0_3, %c0_4] : memref<16x128xf32, #tpu.memory_space<vmem>>, vector<16x128xf32>
    %cst = arith.constant dense<0.000000e+00> : vector<128x128xf32>
    %3 = tpu.matmul %0, %1, %cst {dimension_numbers = #tpu.dot_dimension_numbers<[1], [0], [0], [1], [0, 0, 1, 1], [], []>} : vector<128x8xf32>, vector<8x128xf32>, vector<128x128xf32> -> vector<128x128xf32>
    %cst_5 = arith.constant dense<0.000000e+00> : vector<16x128xf32>
    %4 = tpu.matmul %2, %3, %cst_5 {dimension_numbers = #tpu.dot_dimension_numbers<[1], [1], [0], [0], [0, 0, 1, 0], [], []>} : vector<16x128xf32>, vector<128x128xf32>, vector<16x128xf32> -> vector<16x128xf32>
    %5 = arith.mulf %2, %2 : vector<16x128xf32>
    %cst_6 = arith.constant dense<0.000000e+00> : vector<16xf32>
    %6 = vector.multi_reduction <add>, %5, %cst_6 [1] : vector<16x128xf32> to vector<16xf32>
    %7 = vector.shape_cast %6 : vector<16xf32> to vector<16x1xf32>
    %8 = arith.mulf %3, %3 : vector<128x128xf32>
    %cst_7 = arith.constant dense<0.000000e+00> : vector<128xf32>
    %9 = vector.multi_reduction <add>, %8, %cst_7 [1] : vector<128x128xf32> to vector<128xf32>
    %10 = vector.shape_cast %9 : vector<128xf32> to vector<1x128xf32>
    %cst_8 = arith.constant 2.000000e+00 : f32
    %11 = vector.broadcast %cst_8 : f32 to vector<16x128xf32>
    %12 = arith.mulf %11, %4 : vector<16x128xf32>
    %13 = vector.broadcast %7 : vector<16x1xf32> to vector<16x128xf32>
    %14 = arith.subf %12, %13 : vector<16x128xf32>
    %15 = vector.broadcast %10 : vector<1x128xf32> to vector<16x128xf32>
    %16 = arith.subf %14, %15 : vector<16x128xf32>
    %c0_9 = arith.constant 0 : index
    %c0_10 = arith.constant 0 : index
    %17 = vector.load %arg4[%c0_9, %c0_10] : memref<16x128xf32, #tpu.memory_space<vmem>>, vector<16x128xf32>
    tpu.vector_store %arg4[%c0_9, %c0_10], %16 {strides = array<i32>} : memref<16x128xf32, #tpu.memory_space<vmem>>, vector<16x128xf32>,
    %18 = tpu.iota {dimensions = array<i32: 1>} : vector<16x128xi32>
    %c4_i32 = arith.constant 4 : i32
    %19 = vector.broadcast %c4_i32 : i32 to vector<16x128xi32>
    %20 = arith.cmpi slt, %18, %19 : vector<16x128xi32>
    %cst_11 = arith.constant 1.000000e+00 : f32
    %21 = vector.broadcast %cst_11 : f32 to vector<16x128xf32>
    %22 = arith.mulf %16, %21 : vector<16x128xf32>
    %cst_12 = arith.constant -1.000000e+30 : f32
    %23 = vector.broadcast %cst_12 : f32 to vector<16x128xf32>
    %24 = arith.select %20, %22, %23 : vector<16x128xi1>, vector<16x128xf32>
    %c0_13 = arith.constant 0 : index
    %c0_14 = arith.constant 0 : index
    %25 = vector.load %arg3[%c0_13, %c0_14] : memref<16x128xf32, #tpu.memory_space<vmem>>, vector<16x128xf32>
    %cst_15 = arith.constant 1.000000e+00 : f32
    %26 = vector.broadcast %cst_15 : f32 to vector<16x128xf32>
    %27 = arith.mulf %25, %26 : vector<16x128xf32>
    %cst_16 = arith.constant -1.000000e+30 : f32
    %28 = vector.broadcast %cst_16 : f32 to vector<16x128xf32>
    %29 = arith.select %20, %27, %28 : vector<16x128xi1>, vector<16x128xf32>
    %cst_17 = arith.constant dense<0xFF800000> : vector<16xf32>
    %30 = vector.multi_reduction <maximumf>, %24, %cst_17 [1] : vector<16x128xf32> to vector<16xf32>
    %31 = vector.shape_cast %30 : vector<16xf32> to vector<16x1xf32>
    %32 = vector.broadcast %31 : vector<16x1xf32> to vector<16x128xf32>
    %33 = arith.subf %24, %32 : vector<16x128xf32>
    %34 = math.exp %33 : vector<16x128xf32>
    %cst_18 = arith.constant 0.000000e+00 : f32
    %35 = vector.broadcast %cst_18 : f32 to vector<16x128xf32>
    %36 = arith.select %20, %34, %35 : vector<16x128xi1>, vector<16x128xf32>
    %cst_19 = arith.constant dense<0.000000e+00> : vector<16xf32>
    %37 = vector.multi_reduction <add>, %36, %cst_19 [1] : vector<16x128xf32> to vector<16xf32>
    %38 = vector.shape_cast %37 : vector<16xf32> to vector<16x1xf32>
    %39 = math.log %38 : vector<16x1xf32>
    %40 = vector.broadcast %39 : vector<16x1xf32> to vector<16x128xf32>
    %41 = arith.subf %33, %40 : vector<16x128xf32>
    %cst_20 = arith.constant dense<0xFF800000> : vector<16xf32>
    %42 = vector.multi_reduction <maximumf>, %29, %cst_20 [1] : vector<16x128xf32> to vector<16xf32>
    %43 = vector.shape_cast %42 : vector<16xf32> to vector<16x1xf32>
    %44 = vector.broadcast %43 : vector<16x1xf32> to vector<16x128xf32>
    %45 = arith.subf %29, %44 : vector<16x128xf32>
    %46 = math.exp %45 : vector<16x128xf32>
    %cst_21 = arith.constant 0.000000e+00 : f32
    %47 = vector.broadcast %cst_21 : f32 to vector<16x128xf32>
    %48 = arith.select %20, %46, %47 : vector<16x128xi1>, vector<16x128xf32>
    %cst_22 = arith.constant dense<0.000000e+00> : vector<16xf32>
    %49 = vector.multi_reduction <add>, %48, %cst_22 [1] : vector<16x128xf32> to vector<16xf32>
    %50 = vector.shape_cast %49 : vector<16xf32> to vector<16x1xf32>
    %51 = math.log %50 : vector<16x1xf32>
    %52 = vector.broadcast %51 : vector<16x1xf32> to vector<16x128xf32>
    %53 = arith.subf %45, %52 : vector<16x128xf32>
    %54 = math.exp %53 : vector<16x128xf32>
    %55 = arith.subf %53, %41 : vector<16x128xf32>
    %56 = arith.mulf %54, %55 : vector<16x128xf32>
    %cst_23 = arith.constant 0.000000e+00 : f32
    %57 = vector.broadcast %cst_23 : f32 to vector<16x128xf32>
    %58 = arith.select %20, %56, %57 : vector<16x128xi1>, vector<16x128xf32>
    %59 = vector.shape_cast %58 : vector<16x128xf32> to vector<1x16x128xf32>
    %cst_24 = arith.constant dense<0.000000e+00> : vector<1xf32>
    %60 = vector.multi_reduction <add>, %59, %cst_24 [1, 2] : vector<1x16x128xf32> to vector<1xf32>
    %61 = vector.shape_cast %60 : vector<1xf32> to vector<1x1x1xf32>
    %62 = vector.extract %61[0, 0, 0] : f32 from vector<1x1x1xf32>
    %cst_25 = arith.constant 6.250000e-02 : f32
    %63 = arith.mulf %62, %cst_25 : f32
    %c0_26 = arith.constant 0 : index
    %c0_27 = arith.constant 0 : index
    %64 = memref.load %arg5[%c0_26, %c0_27] : memref<1x1xf32, #tpu.memory_space<smem>>
    memref.store %63, %arg5[%c0_26, %c0_27] : memref<1x1xf32, #tpu.memory_space<smem>>
    return
  }
}

</mosaic_0001>

<bundles_post_ra>
// kernel: tpu_custom_call.1
= control target key start
LH: loop header
LB: loop body
LE: loop exit
PB: predicated region body
PF: predicated region fallthrough
CT: control target
= control target key end

     0   :  { %11 = vsyncpa [#allocation3], 0  ;;  %vm40_vm0 = vcmask 64512   ;;  %s1056_s0 = inlined_call_operand.vmem [shape: f32[128,8], index: 0, kind: input, shape index: {}]   ;;  %s1057_s1 = inlined_call_operand.vmem [shape: f32[8,128], index: 1, kind: input, shape index: {}]   ;;  %s1058_s2 = inlined_call_operand.vmem [shape: f32[16,128], index: 2, kind: input, shape index: {}]   ;;  %s1059_s3 = inlined_call_operand.vmem [shape: f32[16,128], index: 3, kind: input, shape index: {}]   ;;  %s1060_s4 = inlined_call_operand.hbm [shape: f32[16,128], index: 4, kind: output, shape index: {0}]   ;;  %s1061_s5 = inlined_call_operand.hbm [shape: f32[1,1], index: 5, kind: output, shape index: {1}]  }
   0x1   :  { %v37_v0 = vld [vmem:[%s1057_s1] sm:$0xff]  ;;  %v22_v2 = vld [vmem:[%s1056_s0 + $0x8] sm:$0xff]  ;;  %v23_v3 = vld [vmem:[%s1056_s0 + $0x10] sm:$0xff] }
   0x2   :  { %v21_v1 = vld [vmem:[%s1056_s0] sm:$0xff]  ;;  %665 = vmatprep.subr.mxu0 %v37_v0  ;;  %v24_v4 = vld [vmem:[%s1056_s0 + $0x18] sm:$0xff] }
   0x3   :  { %667 = vmatprep.mubr.msk.f32.mxu0 %vm40_vm0, %v21_v1  ;;  %666 = vmatpush3.msra.mxu0 %v37_v0  ;;  %v25_v5 = vld [vmem:[%s1056_s0 + $0x20] sm:$0xff] }
   0x4   :  { %668 = vmatmul.mubr.msk.f32.vlgmr.msra.gmra.mrb[0].mxu0 %vm40_vm0, %v22_v2 }
   0x5   :  { %670 = vmatprep.mubr.msk.f32.mxu0 %vm40_vm0, %v23_v3 }
   0x6   :  { %12 = vsyncpa [#allocation4], 0  ;;  %v26_v6 = vld [vmem:[%s1056_s0 + $0x28] sm:$0xff]  ;;  %v27_v7 = vld [vmem:[%s1056_s0 + $0x30] sm:$0xff]  ;;  %v383_v52 = vlaneseq  ;;  %vm394_vm2 = vcmask 130112   ;;  %vm401_vm3 = vcmask 195712  }
   0x7   :  { %v28_v8 = vld [vmem:[%s1056_s0 + $0x38] sm:$0xff]  ;;  %v29_v9 = vld [vmem:[%s1056_s0 + $0x40] sm:$0xff]  ;;  %v30_v10 = vld [vmem:[%s1056_s0 + $0x48] sm:$0xff]  ;;  %vm408_vm4 = vcmask 261312   ;;  %vm415_vm5 = vcmask 326912   ;;  %vm422_vm6 = vcmask 392512  }
   0x8   :  { %671 = vmatmul.mubr.msk.f32.gmra.mrb[2].mxu0 %vm40_vm0, %v24_v4  ;;  %v31_v11 = vld [vmem:[%s1056_s0 + $0x50] sm:$0xff]  ;;  %v32_v12 = vld [vmem:[%s1056_s0 + $0x58] sm:$0xff]  ;;  %v33_v13 = vld [vmem:[%s1056_s0 + $0x60] sm:$0xff]  ;;  %v927_v58 = vand.u32 127, %v383_v52  ;;  %vm429_vm7 = vcmask 458112   ;;  %vm436_vm8 = vcmask 523712  }
   0x9   :  { %673 = vmatprep.mubr.msk.f32.mxu0 %vm40_vm0, %v25_v5  ;;  %v34_v14 = vld [vmem:[%s1056_s0 + $0x68] sm:$0xff]  ;;  %v35_v15 = vld [vmem:[%s1056_s0 + $0x70] sm:$0xff]  ;;  %v36_v16 = vld [vmem:[%s1056_s0 + $0x78] sm:$0xff]  ;;  %vm443_vm9 = vcmask 589312   ;;  %vm450_vm10 = vcmask 654912   ;;  %vm457_vm11 = vcmask 720512  }
   0xa   :  { %v924_v17 = vld [vmem:[%s1058_s2] sm:$0xff]  ;;  %v39_v61 = vld [vmem:[%s1058_s2 + $0x8] sm:$0xff]  ;;  %vm511_vm1 = vcmp.lt.s32.totalorder %v927_v58, 4  ;;  %vm464_vm12 = vcmask 786112   ;;  %vm471_vm13 = vcmask 851712   ;;  %vm478_vm14 = vcmask 917312  }
   0xb   :  { %723 = vmatprep.mubr.f32.mxu1 %v924_v17  ;;  %v309_v60 = vmul.f32 %v924_v17, %v924_v17  ;;  %v514_v62 = vld [vmem:[%s1059_s3] sm:$0xff]  ;;  %v310_v63 = vmul.f32 %v39_v61, %v39_v61  ;;  %v515_v0 = vld [vmem:[%s1059_s3 + $0x8] sm:$0xff]  ;;  %vm485_vm15 = vcmask 982912   ;;  %s820_s2 = smov [#allocation2]  }
   0xc   :  { %674 = vmatmul.mubr.msk.f32.gmra.mrb[4].mxu0 %vm40_vm0, %v26_v6  ;;  %v943_v1 = vsel %vm511_vm1, %v514_v62, -1e+30  ;;  %v947_v2 = vsel %vm511_vm1, %v515_v0, -1e+30  ;;  %s590_s3 = sshll.u32 %s820_s2, 4  ;;  %s591_s3 = int_to_ptr.vmem [resolvable:$true] %s590_s3 }
   0xd   :  { %676 = vmatprep.mubr.msk.f32.mxu0 %vm40_vm0, %v27_v7  ;;  %s784_s7 = scalar_lea.vmem %s591_s3, 256  ;;  %p789_p1 = scmp.lt.s32.totalorder %s591_s3, %s591_s3 }
   0xe   :  { %p785_p0 = scmp.ne.s32.totalorder %s591_s3, %s784_s7  ;;  %p790_p2 = scmp.lt.s32.totalorder %s784_s7, %s784_s7 }
  0x10   :  { %677 = vmatmul.mubr.msk.f32.gmra.mrb[6].mxu0 %vm40_vm0, %v28_v8  ;;  %p791_p3 = por %p790_p2, %p789_p1 }
  0x11   :  { %679 = vmatprep.mubr.msk.f32.mxu0 %vm40_vm0, %v29_v9 }
  0x12   :  { %p792_p4 = pnand %p791_p3, %p785_p0 }
  0x14   :  { %680 = vmatmul.mubr.msk.f32.gmra.mrb[8].mxu0 %vm40_vm0, %v30_v10 }
  0x15   :  { %682 = vmatprep.mubr.msk.f32.mxu0 %vm40_vm0, %v31_v11 }
  0x18   :  { %683 = vmatmul.mubr.msk.f32.gmra.mrb[10].mxu0 %vm40_vm0, %v32_v12 }
  0x19   :  { %685 = vmatprep.mubr.msk.f32.mxu0 %vm40_vm0, %v33_v13  ;;  %v396_v13 = vadd.s32 4294967280, %v927_v58 }
  0x1c   :  { %686 = vmatmul.mubr.msk.f32.gmra.mrb[12].mxu0 %vm40_vm0, %v34_v14 }
  0x1d   :  { %688 = vmatprep.mubr.msk.f32.mxu0 %vm40_vm0, %v35_v15  ;;  %v954_v15 = vshrl.u32 %v383_v52, 7 }
  0x20   :  { %689 = vmatmul.mubr.msk.f32.gmra.mrb[14].mxu0 %vm40_vm0, %v36_v16  ;;  %v389_v16 = vadd.s32 4294967288, %v927_v58  ;;  %vm492_vm0 = vcmask 1048512  }
  0xd7   :  { %v669_v18 = vpop.f32.mrb[0].mxu0 }
  0xd8   :  { %v155_v19 = vpop.f32.mrb[1].mxu0  ;;  %v316_v20 = vmul.f32 %v669_v18, %v669_v18 }
  0xd9   :  { %v726_v21 = vpack.c.bf16 %v669_v18, %v155_v19  ;;  %v315_v23 = vmul.f32 %v155_v19, %v155_v19  ;;  %v387_v18 = vsub.s32 %v927_v58, %v954_v15  ;;  %v403_v19 = vadd.s32 4294967272, %v927_v58 }
  0xda   :  { %333 = vadd.xlane.f32.xlu0 %v316_v20  ;;  %v399_v20 = vsub.s32 %v396_v13, %v954_v15 }
  0xdb   :  { %v672_v22 = vpop.f32.mrb[2].mxu0  ;;  %727 = vmatprep.subr.bf16.mxu1 %v726_v21 }
  0xdc   :  { %729 = vmatpush3.bf16.xpose.msra.mxu1 %v726_v21  ;;  %v318_v24 = vmul.f32 %v672_v22, %v672_v22  ;;  %v165_v25 = vpop.f32.mrb[3].mxu0  ;;  %v392_v21 = vsub.s32 %v389_v16, %v954_v15 }
  0xdd   :  { %v730_v26 = vpack.c.bf16 %v672_v22, %v165_v25  ;;  %v317_v27 = vmul.f32 %v165_v25, %v165_v25  ;;  %v410_v22 = vadd.s32 4294967264, %v927_v58  ;;  %v406_v25 = vsub.s32 %v403_v19, %v954_v15 }
  0xde   :  { %331 = vadd.xlane.f32.xlu0 %v315_v23  ;;  %337 = vadd.xlane.f32.xlu1 %v318_v24 }
  0xdf   :  { %v675_v28 = vpop.f32.mrb[4].mxu0  ;;  %731 = vmatprep.subr.bf16.mxu1 %v730_v26 }
  0xe0   :  { %v175_v29 = vpop.f32.mrb[5].mxu0  ;;  %v320_v32 = vmul.f32 %v675_v28, %v675_v28 }
  0xe1   :  { %v734_v30 = vpack.c.bf16 %v675_v28, %v175_v29  ;;  %v319_v31 = vmul.f32 %v175_v29, %v175_v29  ;;  %v417_v29 = vadd.s32 4294967256, %v927_v58 }
  0xe2   :  { %335 = vadd.xlane.f32.xlu1 %v317_v27 }
  0xe3   :  { %339 = vadd.xlane.f32.xlu0 %v319_v31  ;;  %v678_v33 = vpop.f32.mrb[6].mxu0 }
  0xe4   :  { %v185_v34 = vpop.f32.mrb[7].mxu0  ;;  %733 = vmatpush3.bf16.xpose.msra.mxu1 %v730_v26  ;;  %v322_v37 = vmul.f32 %v678_v33, %v678_v33 }
  0xe5   :  { %v738_v35 = vpack.c.bf16 %v678_v33, %v185_v34  ;;  %v321_v36 = vmul.f32 %v185_v34, %v185_v34  ;;  %735 = vmatprep.subr.bf16.mxu1 %v734_v30  ;;  %v424_v34 = vadd.s32 4294967248, %v927_v58 }
  0xe6   :  { %341 = vadd.xlane.f32.xlu1 %v320_v32 }
  0xe7   :  { %343 = vadd.xlane.f32.xlu0 %v321_v36  ;;  %v681_v38 = vpop.f32.mrb[8].mxu0  ;;  %v420_v36 = vsub.s32 %v417_v29, %v954_v15 }
  0xe8   :  { %v195_v39 = vpop.f32.mrb[9].mxu0  ;;  %v324_v42 = vmul.f32 %v681_v38, %v681_v38 }
  0xe9   :  { %v742_v40 = vpack.c.bf16 %v681_v38, %v195_v39  ;;  %v323_v41 = vmul.f32 %v195_v39, %v195_v39 }
  0xea   :  { %345 = vadd.xlane.f32.xlu1 %v322_v37  ;;  %v431_v37 = vadd.s32 4294967240, %v927_v58 }
  0xeb   :  { %347 = vadd.xlane.f32.xlu0 %v323_v41  ;;  %v684_v43 = vpop.f32.mrb[10].mxu0  ;;  %v427_v41 = vsub.s32 %v424_v34, %v954_v15 }
  0xec   :  { %v205_v44 = vpop.f32.mrb[11].mxu0  ;;  %737 = vmatpush3.bf16.xpose.msra.mxu1 %v734_v30  ;;  %v326_v47 = vmul.f32 %v684_v43, %v684_v43  ;;  %v413_v30 = vsub.s32 %v410_v22, %v954_v15 }
  0xed   :  { %v746_v45 = vpack.c.bf16 %v684_v43, %v205_v44  ;;  %v325_v46 = vmul.f32 %v205_v44, %v205_v44  ;;  %739 = vmatprep.subr.bf16.mxu1 %v738_v35 }
  0xee   :  { %349 = vadd.xlane.f32.xlu1 %v324_v42  ;;  %v438_v42 = vadd.s32 4294967232, %v927_v58 }
  0xef   :  { %351 = vadd.xlane.f32.xlu0 %v325_v46  ;;  %v687_v48 = vpop.f32.mrb[12].mxu0  ;;  %v445_v46 = vadd.s32 4294967224, %v927_v58 }
  0xf0   :  { %v215_v49 = vpop.f32.mrb[13].mxu0  ;;  %v328_v53 = vmul.f32 %v687_v48, %v687_v48 }
  0xf1   :  { %v750_v50 = vpack.c.bf16 %v687_v48, %v215_v49  ;;  %v327_v51 = vmul.f32 %v215_v49, %v215_v49 }
  0xf2   :  { %353 = vadd.xlane.f32.xlu1 %v326_v47 }
  0xf3   :  { %355 = vadd.xlane.f32.xlu0 %v327_v51  ;;  %v690_v54 = vpop.f32.mrb[14].mxu0  ;;  %v452_v51 = vadd.s32 4294967216, %v927_v58 }
  0xf4   :  { %v225_v55 = vpop.f32.mrb[15].mxu0  ;;  %741 = vmatpush3.bf16.xpose.msra.mxu1 %v738_v35  ;;  %v330_v59 = vmul.f32 %v690_v54, %v690_v54 }
  0xf5   :  { %v754_v56 = vpack.c.bf16 %v690_v54, %v225_v55  ;;  %v329_v57 = vmul.f32 %v225_v55, %v225_v55  ;;  %743 = vmatprep.subr.bf16.mxu1 %v742_v40  ;;  %v448_v54 = vsub.s32 %v445_v46, %v954_v15  ;;  %v459_v55 = vadd.s32 4294967208, %v927_v58 }
  0xf6   :  { %357 = vadd.xlane.f32.xlu1 %v328_v53  ;;  %v455_v62 = vsub.s32 %v452_v51, %v954_v15 }
  0xf7   :  { %359 = vadd.xlane.f32.xlu0 %v329_v57  ;;  %v466_v57 = vadd.s32 4294967200, %v927_v58 }
  0xfa   :  { %361 = vadd.xlane.f32.xlu1 %v330_v59 }
  0xfb   :  { %311 = vadd.xlane.f32.xlu0 %v309_v60 }
  0xfc   :  { %745 = vmatpush3.bf16.xpose.msra.mxu1 %v742_v40 }
  0xfd   :  { %747 = vmatprep.subr.bf16.mxu1 %v746_v45 }
  0xfe   :  { %313 = vadd.xlane.f32.xlu1 %v310_v63  ;;  %v473_v63 = vadd.s32 4294967192, %v927_v58 }
  0xff   :  { %540 = vmax.xlane.f32.xlu0 %v943_v1 }
 0x102   :  { %542 = vmax.xlane.f32.xlu1 %v947_v2 }
 0x104   :  { %749 = vmatpush3.bf16.xpose.msra.mxu1 %v746_v45  ;;  %v434_v45 = vsub.s32 %v431_v37, %v954_v15 }
 0x105   :  { %751 = vmatprep.subr.bf16.mxu1 %v750_v50 }
 0x10c   :  { %753 = vmatpush3.bf16.xpose.msra.mxu1 %v750_v50  ;;  %v441_v50 = vsub.s32 %v438_v42, %v954_v15 }
 0x10d   :  { %755 = vmatprep.subr.bf16.mxu1 %v754_v56 }
 0x114   :  { %757 = vmatpush3.bf16.xpose.msra.mxu1 %v754_v56 }
 0x11b   :  { %724 = vmatmul.mubr.f32.vlgmr.msra.gmra.mrb[0].mxu1 %v39_v61 }
 0x167   :  { %v334_v4 = vpop.xlane.xlu0 %333 }
 0x168   :  { %v393_v28 = vrot.slane %v334_v4, %v392_v21  ;;  %v462_v4 = vsub.s32 %v459_v55, %v954_v15 }
 0x16b   :  { %v338_v3 = vpop.xlane.xlu1 %337  ;;  %v332_v6 = vpop.xlane.xlu0 %331 }
 0x16c   :  { %v388_v24 = vrot.slane %v332_v6, %v387_v18  ;;  %v407_v32 = vrot.slane %v338_v3, %v406_v25 }
 0x16e   :  { %v395_v31 = vsel %vm394_vm2, %v393_v28, %v388_v24 }
 0x16f   :  { %v336_v5 = vpop.xlane.xlu1 %335 }
 0x170   :  { %v340_v8 = vpop.xlane.xlu0 %339  ;;  %v400_v27 = vrot.slane %v336_v5, %v399_v20 }
 0x171   :  { %v414_v39 = vrot.slane %v340_v8, %v413_v30 }
 0x172   :  { %v402_v33 = vsel %vm401_vm3, %v400_v27, %v395_v31 }
 0x173   :  { %v342_v7 = vpop.xlane.xlu1 %341  ;;  %v409_v40 = vsel %vm408_vm4, %v407_v32, %v402_v33 }
 0x174   :  { %v344_v10 = vpop.xlane.xlu0 %343  ;;  %v421_v44 = vrot.slane %v342_v7, %v420_v36  ;;  %v416_v48 = vsel %vm415_vm5, %v414_v39, %v409_v40  ;;  %v469_v7 = vsub.s32 %v466_v57, %v954_v15 }
 0x175   :  { %v428_v49 = vrot.slane %v344_v10, %v427_v41  ;;  %v476_v10 = vsub.s32 %v473_v63, %v954_v15 }
 0x176   :  { %v423_v52 = vsel %vm422_vm6, %v421_v44, %v416_v48 }
 0x177   :  { %v346_v9 = vpop.xlane.xlu1 %345  ;;  %v430_v60 = vsel %vm429_vm7, %v428_v49, %v423_v52 }
 0x178   :  { %v348_v12 = vpop.xlane.xlu0 %347  ;;  %v435_v53 = vrot.slane %v346_v9, %v434_v45 }
 0x179   :  { %v442_v61 = vrot.slane %v348_v12, %v441_v50  ;;  %v480_v12 = vadd.s32 4294967184, %v927_v58 }
 0x17a   :  { %v437_v0 = vsel %vm436_vm8, %v435_v53, %v430_v60 }
 0x17b   :  { %v350_v11 = vpop.xlane.xlu1 %349  ;;  %v444_v8 = vsel %vm443_vm9, %v442_v61, %v437_v0 }
 0x17c   :  { %v957_v17 = vpop.xlane.xlu0 %351  ;;  %v449_v3 = vrot.slane %v350_v11, %v448_v54 }
 0x17d   :  { %v456_v9 = vrot.slane %v957_v17, %v455_v62  ;;  %v483_v17 = vsub.s32 %v480_v12, %v954_v15 }
 0x17e   :  { %v451_v11 = vsel %vm450_vm10, %v449_v3, %v444_v8 }
 0x17f   :  { %v952_v14 = vpop.xlane.xlu1 %353  ;;  %v458_v18 = vsel %vm457_vm11, %v456_v9, %v451_v11 }
 0x180   :  { %v968_v26 = vpop.xlane.xlu0 %355  ;;  %v463_v13 = vrot.slane %v952_v14, %v462_v4 }
 0x181   :  { %v470_v19 = vrot.slane %v968_v26, %v469_v7 }
 0x182   :  { %v465_v20 = vsel %vm464_vm12, %v463_v13, %v458_v18 }
 0x183   :  { %v965_v23 = vpop.xlane.xlu1 %357  ;;  %v472_v14 = vsel %vm471_vm13, %v470_v19, %v465_v20 }
 0x184   :  { %v360_v38 = vpop.xlane.xlu0 %359  ;;  %v477_v21 = vrot.slane %v965_v23, %v476_v10 }
 0x185   :  { %v484_v24 = vrot.slane %v360_v38, %v483_v17 }
 0x186   :  { %v479_v25 = vsel %vm478_vm14, %v477_v21, %v472_v14 }
 0x187   :  { %v973_v35 = vpop.xlane.xlu1 %361  ;;  %v486_v31 = vsel %vm485_vm15, %v484_v24, %v479_v25 }
 0x188   :  { %v983_v47 = vpop.xlane.xlu0 %311 }
 0x18b   :  { %v979_v43 = vpop.xlane.xlu1 %313 }
 0x18c   :  { %v541_v59 = vpop.xlane.xlu0 %540 }
 0x18d   :  { %v997_v6 = vsub.f32 %v943_v1, %v541_v59 }
 0x18f   :  { %v543_v56 = vpop.xlane.xlu1 %542  ;;  %v546_v1 = vmul.f32 1.442695, %v997_v6 }
 0x190   :  { %v994_v5 = vsub.f32 %v947_v2, %v543_v56  ;;  %v487_v2 = vadd.s32 4294967176, %v927_v58 }
 0x192   :  { %v548_v16 = vmul.f32 1.442695, %v994_v5  ;;  %v490_v22 = vsub.s32 %v487_v2, %v954_v15 }
 0x194   :  { %764 = vpow2.f32 %v548_v16  ;;  %v491_v27 = vrot.slane %v973_v35, %v490_v22 }
 0x195   :  { %766 = vpow2.f32 %v546_v1 }
 0x196   :  { %v493_v15 = vsel %vm492_vm0, %v491_v27, %v486_v31 }
 0x19e   :  { %v765_v34 = vpop.eup %764 }
 0x19f   :  { %v767_v37 = vpop.eup %766  ;;  %v551_v39 = vsel %vm511_vm1, %v765_v34, 0.0 }
 0x1a0   :  { %v550_v40 = vsel %vm511_vm1, %v767_v37, 0.0 }
 0x1ee   :  { %v725_v28 = vpop.f32.mrb[0].mxu1 }
 0x1ef   :  { %v364_v29 = vmul.f32 2.0, %v725_v28  ;;  %v300_v30 = vpop.f32.mrb[1].mxu1 }
 0x1f0   :  { %v363_v26 = vmul.f32 2.0, %v300_v30 }
 0x1f1   :  { %v366_v32 = vsub.f32 %v364_v29, %v979_v43 }
 0x1f2   :  { %v365_v23 = vsub.f32 %v363_v26, %v983_v47 }
 0x1f3   :  { %v508_v33 = vsub.f32 %v366_v32, %v493_v15 }
 0x1f4   :  { %v507_v36 = vsub.f32 %v365_v23, %v493_v15 }
 0x1f5   :  { %v513_v38 = vsel %vm511_vm1, %v508_v33, -1e+30  ;;  %510 = vst [vmem:[#allocation2 + $0x8] sm:$0xff] %v508_v33 }
 0x1f6   :  { %520 = vmax.xlane.f32.xlu1 %v513_v38  ;;  %v512_v35 = vsel %vm511_vm1, %v507_v36, -1e+30  ;;  %509 = vst [vmem:[#allocation2] sm:$0xff] %v507_v36 }
 0x1f7   :  { %518 = vmax.xlane.f32.xlu0 %v512_v35 }
 0x1fa   :  { %554 = vadd.xlane.f32.xlu1 %v551_v39 }
 0x1fb   :  { %552 = vadd.xlane.f32.xlu0 %v550_v40 }
 0x283   :  { %v521_v41 = vpop.xlane.xlu1 %520 }
 0x284   :  { %v523_v42 = vsub.f32 %v513_v38, %v521_v41  ;;  %v519_v43 = vpop.xlane.xlu0 %518 }
 0x285   :  { %v522_v44 = vsub.f32 %v512_v35, %v519_v43 }
 0x286   :  { %v526_v45 = vmul.f32 1.442695, %v523_v42 }
 0x287   :  { %v524_v46 = vmul.f32 1.442695, %v522_v44  ;;  %v555_v51 = vpop.xlane.xlu1 %554 }
 0x288   :  { %768 = vpow2.f32 %v526_v45  ;;  %v553_v52 = vpop.xlane.xlu0 %552 }
 0x289   :  { %770 = vpow2.f32 %v524_v46 }
 0x28a   :  { %772 = vlog2.f32 %v555_v51 }
 0x28b   :  { %774 = vlog2.f32 %v553_v52 }
 0x292   :  { %v769_v47 = vpop.eup %768 }
 0x293   :  { %v771_v48 = vpop.eup %770  ;;  %v529_v49 = vsel %vm511_vm1, %v769_v47, 0.0 }
 0x294   :  { %532 = vadd.xlane.f32.xlu1 %v529_v49  ;;  %v528_v50 = vsel %vm511_vm1, %v771_v48, 0.0  ;;  %v773_v53 = vpop.eup %772 }
 0x295   :  { %530 = vadd.xlane.f32.xlu0 %v528_v50  ;;  %v775_v54 = vpop.eup %774  ;;  %v559_v55 = vmul.f32 0.6931472, %v773_v53 }
 0x296   :  { %v557_v56 = vmul.f32 0.6931472, %v775_v54 }
 0x297   :  { %v561_v57 = vsub.f32 %v994_v5, %v559_v55 }
 0x298   :  { %v560_v59 = vsub.f32 %v997_v6, %v557_v56 }
 0x299   :  { %v564_v62 = vmul.f32 1.442695, %v561_v57 }
 0x29a   :  { %v562_v63 = vmul.f32 1.442695, %v560_v59 }
 0x321   :  { %v533_v60 = vpop.xlane.xlu1 %532 }
 0x322   :  { %776 = vlog2.f32 %v533_v60  ;;  %v531_v61 = vpop.xlane.xlu0 %530 }
 0x323   :  { %778 = vlog2.f32 %v531_v61 }
 0x324   :  { %780 = vpow2.f32 %v564_v62 }
 0x325   :  { %782 = vpow2.f32 %v562_v63 }
 0x32c   :  { %v777_v0 = vpop.eup %776 }
 0x32d   :  { %v779_v3 = vpop.eup %778  ;;  %v537_v4 = vmul.f32 0.6931472, %v777_v0 }
 0x32e   :  { %v535_v7 = vmul.f32 0.6931472, %v779_v3  ;;  %v781_v12 = vpop.eup %780 }
 0x32f   :  { %v539_v8 = vsub.f32 %v523_v42, %v537_v4  ;;  %v783_v5 = vpop.eup %782 }
 0x330   :  { %v538_v9 = vsub.f32 %v522_v44, %v535_v7 }
 0x331   :  { %v567_v10 = vsub.f32 %v561_v57, %v539_v8 }
 0x332   :  { %v566_v11 = vsub.f32 %v560_v59, %v538_v9 }
 0x333   :  { %v569_v13 = vmul.f32 %v781_v12, %v567_v10 }
 0x334   :  { %v568_v6 = vmul.f32 %v783_v5, %v566_v11 }
 0x335   :  { %v571_v2 = vsel %vm511_vm1, %v569_v13, 0.0 }
 0x336   :  { %v570_v16 = vsel %vm511_vm1, %v568_v6, 0.0 }
 0x337   :  { %v572_v1 = vadd.f32 %v571_v2, %v570_v16 }
 0x339   :  { %573 = vadd.xlane.f32.xlu0 %v572_v1 }
 0x33a   :  { %795 = shalt.err (!%p792_p4)
}
 0x33b   :  { %s796_s10 = scalar_lea.hbm %s1060_s4, 256 }
 0x33c   :  { %p797_p5 = scmp.ne.s32.totalorder %s1060_s4, %s796_s10  ;;  %p800_p6 = scmp.lt.u32.totalorder %s796_s10, %s1060_s4 }
 0x33e   :  { %p802_p7 = pnand %p800_p6, %p797_p5 }
 0x340   :  { %805 = shalt.err (!%p802_p7)
}
 0x341   :  { %s821_s15 = smov 128   ;;  %s822_s16 = smov 8  }
 0x342   :  { %596 = dma.vmem_to_hbm [thread:$0]  %s591_s3, 256, %s1060_s4, [#allocation3], %s821_s15, %s821_s15, %s822_s16  }
 0x343   :  { %s806_s23 = scalar_lea.hbm %s1061_s5, 16 }
 0x344   :  { %p807_p8 = scmp.ne.s32.totalorder %s1061_s5, %s806_s23  ;;  %p810_p9 = scmp.lt.u32.totalorder %s806_s23, %s1061_s5 }
 0x346   :  { %p812_p10 = pnand %p810_p9, %p807_p8 }
 0x3c6   :  { %v574_v58 = vpop.xlane.xlu0 %573 }
 0x3c7   :  { %v575_v18 = vrot.slane %v574_v58, 4 }
 0x3c9   :  { %v576_v19 = vadd.f32 %v575_v18, %v574_v58 }
 0x3cb   :  { %v577_v17 = vrot.slane %v576_v19, 2 }
 0x3cd   :  { %v578_v20 = vadd.f32 %v577_v17, %v576_v19 }
 0x3cf   :  { %v579_v21 = vrot.slane %v578_v20, 1 }
 0x3d1   :  { %v580_v22 = vadd.f32 %v579_v21, %v578_v20 }
 0x3d3   :  { %758 = vpush %v580_v22 }
 0x404   :  { %s759_s19 = spop %758 }
 0x405   :  { %s582_s20 = smul.f32 0.0625, %s759_s19 }
 0x407   :  { %584 = sst [smem:[#allocation5]] %s582_s20 }
 0x408   :  { %815 = shalt.err (!%p812_p10)
}
 0x409   :  { %s823_s26 = smov [#allocation5]  }
 0x40a   :  { %604 = dma.smem_to_hbm %s823_s26, 16, %s1061_s5, [#allocation4]  }
 0x40b   :  { %816 = dma.done.wait [#allocation3], 256  }
 0x40c   :  { %817 = vsyncadd [#allocation3], 4294967040 }
 0x40d   :  { %818 = dma.done.wait [#allocation4], 16  }
 0x40e   :  { %819 = vsyncadd [#allocation4], 4294967280 }
 0x40f   :  { %611 = sfence }
 0x410   :  { %612 = vsyncpa [#allocation3], 1 }
 0x411   :  { %613 = vsyncpa [#allocation4], 1 }

</bundles_post_ra>
